<compile_context>
chip_gen: v5e
topology: v5e:2x2
jax: 0.10.0
libtpu: 0.0.40
codegen_flags: <defaults>
</compile_context>

<pallas_src>
import jax
import jax.numpy as jnp
import numpy as np
from jax.experimental import pallas as pl
from jax.experimental.pallas import tpu as pltpu


def _normalize_kernel(scale_ref, bias_ref, x_ref, o_ref):
    """Fused uint8 -> float32 cast + per-channel affine normalization.

    scale_ref, bias_ref : SMEM (C,) float32
    x_ref               : VMEM (b_tile, 1, s_tile, L) uint8
    o_ref               : VMEM (b_tile, 1, s_tile, L) float32

    y = float(x) * scale[c] + bias[c]   (==  (x/255 - mean[c]) / std[c])
    """
    c = pl.program_id(1)                          # channel = second grid axis
    x = x_ref[...].astype(jnp.float32)            # u8 -> f32 on the VPU (free @ mem-bound)
    o_ref[...] = x * scale_ref[c] + bias_ref[c]   # scalar broadcast from SMEM


def _plane_layout(n_pixels, max_lane=4096):
    """Factor one channel plane (H*W pixels) into (sublanes S, lanes L), S*L == n.

    Prefers L a multiple of 128 (unmasked full-vreg loads/stores) and S a
    multiple of 8 (full sublane utilization, tileable).  Falls back to a single
    lane-masked row (1, n) when H*W has no suitable divisor.
    """
    best = (1, n_pixels)
    best_score = (-1, -1, 0)
    for lanes in range(128, min(n_pixels, max_lane) + 1, 128):
        if n_pixels % lanes:
            continue
        sub = n_pixels // lanes
        score = (1 if sub % 8 == 0 else 0,          # tileable, full-sublane first
                 1 if 256 <= lanes <= 2048 else 0,  # healthy lane width
                 lanes)
        if score > best_score:
            best_score, best = score, (sub, lanes)
    return best


def _pick_sub_tile(S, L, n_planes, min_step_out=64 << 10,
                   max_step_out=1 << 20, min_total_steps=6):
    """Sublane tile: multiple-of-8 divisor of S, sized so each grid step moves
    >= ~64 KiB of f32 output, each block stays <= ~1 MiB (VMEM-friendly when
    double-buffered on v5e/v6e/v7x), and there are enough steps overall for
    DMA overlap / dual-TC sharding."""
    if S % 8 != 0 or S <= 8:
        return S                                   # full extent (always legal)
    divs = [d for d in range(8, S + 1, 8)
            if S % d == 0 and 4 * d * L <= max_step_out]
    if not divs:
        return 8
    want_s_tiles = max(1, -(-min_total_steps // n_planes))   # ceil
    ok = [d for d in divs if S // d >= want_s_tiles and 4 * d * L >= min_step_out]
    return max(ok) if ok else max(divs)


def _pick_batch_tile(B, plane_out_bytes, target=512 << 10):
    """Group several images per grid step when one channel plane is tiny, so
    each step still moves enough bytes to amortize per-step overhead."""
    if B <= 1 or plane_out_bytes >= (128 << 10):
        return 1
    best = 1
    for bt in range(2, B + 1):
        if B % bt == 0 and bt * plane_out_bytes <= target:
            best = bt
    return best


def transform_forward(x_u8, mean, std):
    """Pallas equivalent of Transform.forward (deterministic path).

    x_u8 : (C, H, W) or (B, C, H, W) uint8 image tensor(s)
    mean, std : (C,) per-channel normalization constants
    returns float32 tensor of the same (possibly batched) CHW shape
    """
    squeeze_batch = x_u8.ndim == 3
    if squeeze_batch:
        x_u8 = x_u8[None]
    B, C, H, W = x_u8.shape

    mean = jnp.asarray(mean, jnp.float32).reshape(C)
    std = jnp.asarray(std, jnp.float32).reshape(C)
    # Fold 1/255 and mean/std into one per-channel scale/bias (glue math).
    scale = (1.0 / (255.0 * std)).astype(jnp.float32)      # (C,) -> SMEM
    bias = (-mean / std).astype(jnp.float32)                # (C,) -> SMEM

    # Full-sublane / lane-dense view of each channel plane (free reshape).
    n_pixels = H * W
    S, L = _plane_layout(n_pixels)
    plane_out_bytes = 4 * S * L                              # f32 bytes per plane

    if plane_out_bytes >= (128 << 10):
        b_tile = 1
        s_tile = _pick_sub_tile(S, L, n_planes=B * C)
    else:
        s_tile = S
        b_tile = _pick_batch_tile(B, plane_out_bytes)

    x4 = x_u8.reshape(B, C, S, L)
    grid = (B // b_tile, C, S // s_tile)
    blk = (b_tile, 1, s_tile, L)

    out = pl.pallas_call(
        _normalize_kernel,
        out_shape=jax.ShapeDtypeStruct((B, C, S, L), jnp.float32),
        grid=grid,
        in_specs=[
            pl.BlockSpec(memory_space=pltpu.MemorySpace.SMEM),   # scale (C,)
            pl.BlockSpec(memory_space=pltpu.MemorySpace.SMEM),   # bias  (C,)
            pl.BlockSpec(blk, lambda b, c, s: (b, c, s, 0)),     # uint8 pixels
        ],
        out_specs=pl.BlockSpec(blk, lambda b, c, s: (b, c, s, 0)),
        compiler_params=pltpu.CompilerParams(
            dimension_semantics=("parallel", "parallel", "parallel")),
    )(scale, bias, x4)

    out = out.reshape(B, C, H, W)
    return out[0] if squeeze_batch else out


if __name__ == "__main__":
    key = jax.random.PRNGKey(0)
    k0, k1, k2 = jax.random.split(key, 3)

    mean = jnp.array([0.485, 0.456, 0.406], jnp.float32)
    std = jnp.array([0.229, 0.224, 0.225], jnp.float32)

    def ref_np(x):
        x = np.asarray(x, np.float32)
        m = np.asarray(mean, np.float32).reshape(3, 1, 1)
        s = np.asarray(std, np.float32).reshape(3, 1, 1)
        return (x / 255.0 - m) / s

    # Small batched example consistent with the module: B RGB images.
    B, C, H, W = 2, 3, 16, 16
    x_u8 = jax.random.randint(k0, (B, C, H, W), 0, 256, dtype=jnp.int32).astype(jnp.uint8)
    y = jax.block_until_ready(transform_forward(x_u8, mean, std))
    assert y.shape == (B, C, H, W) and y.dtype == jnp.float32
    np.testing.assert_allclose(np.asarray(y), ref_np(x_u8), rtol=1e-5, atol=1e-5)

    # Unbatched (C, H, W) path used by the original module.
    y1 = jax.block_until_ready(transform_forward(x_u8[0], mean, std))
    np.testing.assert_allclose(np.asarray(y1), ref_np(x_u8[0]), rtol=1e-5, atol=1e-5)

    # Exercise the full-sublane (multiple-of-8) + batch-tiled path.
    x64 = jax.random.randint(k1, (2, 3, 64, 64), 0, 256, dtype=jnp.int32).astype(jnp.uint8)
    y64 = jax.block_until_ready(transform_forward(x64, mean, std))
    np.testing.assert_allclose(np.asarray(y64), ref_np(x64), rtol=1e-5, atol=1e-5)

    # Exercise the sublane-tiled path on a realistic-ish image size.
    x224 = jax.random.randint(k2, (1, 3, 224, 224), 0, 256, dtype=jnp.int32).astype(jnp.uint8)
    y224 = jax.block_until_ready(transform_forward(x224, mean, std))
    np.testing.assert_allclose(np.asarray(y224), ref_np(x224), rtol=1e-5, atol=1e-5)

    print("KERNEL_OK")
</pallas_src>

<mosaic_0001>
module attributes {stable_mosaic.version = 11 : i64} {
  func.func @_normalize_kernel(%arg0: i32, %arg1: i32, %arg2: i32, %arg3: memref<3xf32, #tpu.memory_space<smem>>, %arg4: memref<3xf32, #tpu.memory_space<smem>>, %arg5: memref<2x1x1x256xi8, #tpu.memory_space<vmem>>, %arg6: memref<2x1x1x256xf32, #tpu.memory_space<vmem>>) attributes {dimension_semantics = [#tpu.dimension_semantics<parallel>, #tpu.dimension_semantics<parallel>, #tpu.dimension_semantics<parallel>], iteration_bounds = array<i64: 1, 3, 1>, scalar_prefetch = 0 : i64, scratch_operands = 0 : i64, tpu.core_type = #tpu.core_type<tc>, window_params = [{transform_indices = @transform_0, window_bounds = array<i64: 3>}, {transform_indices = @transform_1, window_bounds = array<i64: 3>}, {transform_indices = @transform_2, window_bounds = array<i64: 2, 1, 1, 256>}, {transform_indices = @transform_3, window_bounds = array<i64: 2, 1, 1, 256>}]} {
    %c0 = arith.constant 0 : index
    %c0_0 = arith.constant 0 : index
    %c0_1 = arith.constant 0 : index
    %c0_2 = arith.constant 0 : index
    %0 = vector.load %arg5[%c0, %c0_0, %c0_1, %c0_2] : memref<2x1x1x256xi8, #tpu.memory_space<vmem>>, vector<2x1x1x256xi8>
    %1 = arith.uitofp %0 : vector<2x1x1x256xi8> to vector<2x1x1x256xf32>
    %2 = arith.index_cast %arg1 : i32 to index
    %3 = memref.load %arg3[%2] : memref<3xf32, #tpu.memory_space<smem>>
    %4 = vector.broadcast %3 : f32 to vector<2x1x1x256xf32>
    %5 = arith.mulf %1, %4 : vector<2x1x1x256xf32>
    %6 = arith.index_cast %arg1 : i32 to index
    %7 = memref.load %arg4[%6] : memref<3xf32, #tpu.memory_space<smem>>
    %8 = vector.broadcast %7 : f32 to vector<2x1x1x256xf32>
    %9 = arith.addf %5, %8 : vector<2x1x1x256xf32>
    %c0_3 = arith.constant 0 : index
    %c0_4 = arith.constant 0 : index
    %c0_5 = arith.constant 0 : index
    %c0_6 = arith.constant 0 : index
    %10 = vector.load %arg6[%c0_3, %c0_4, %c0_5, %c0_6] : memref<2x1x1x256xf32, #tpu.memory_space<vmem>>, vector<2x1x1x256xf32>
    tpu.vector_store %arg6[%c0_3, %c0_4, %c0_5, %c0_6], %9 {strides = array<i32>} : memref<2x1x1x256xf32, #tpu.memory_space<vmem>>, vector<2x1x1x256xf32>,
    return
  }
  func.func @transform_0(%arg0: i32, %arg1: i32, %arg2: i32) -> i32 {
    %c0_i32 = arith.constant 0 : i32
    %c0_i32_0 = arith.constant 0 : i32
    return %c0_i32 : i32
  }
  func.func @transform_1(%arg0: i32, %arg1: i32, %arg2: i32) -> i32 {
    %c0_i32 = arith.constant 0 : i32
    %c0_i32_0 = arith.constant 0 : i32
    return %c0_i32 : i32
  }
  func.func @transform_2(%arg0: i32, %arg1: i32, %arg2: i32) -> (i32, i32, i32, i32) {
    %c0_i32 = arith.constant 0 : i32
    %c0_i32_0 = arith.constant 0 : i32
    return %arg0, %arg1, %arg2, %c0_i32 : i32, i32, i32, i32
  }
  func.func @transform_3(%arg0: i32, %arg1: i32, %arg2: i32) -> (i32, i32, i32, i32) {
    %c0_i32 = arith.constant 0 : i32
    %c0_i32_0 = arith.constant 0 : i32
    return %arg0, %arg1, %arg2, %c0_i32 : i32, i32, i32, i32
  }
}

</mosaic_0001>

<bundles_post_ra>
// kernel: tpu_custom_call.1
= control target key start
LH: loop header
LB: loop body
LE: loop exit
PB: predicated region body
PF: predicated region fallthrough
CT: control target
= control target key end

     0   :  { %8 = vsyncpa [#allocation4], 0  ;;  %s811_s0 = inlined_call_operand.vmem [shape: f32[3], index: 0, kind: input, shape index: {}]   ;;  %s812_s1 = inlined_call_operand.vmem [shape: f32[3], index: 1, kind: input, shape index: {}]   ;;  %s813_s2 = inlined_call_operand.vmem [shape: u8[2,3,1,256], index: 2, kind: input, shape index: {}]   ;;  %s814_s3 = inlined_call_operand.hbm [shape: f32[2,3,1,256], index: 3, kind: output, shape index: {}]  }
   0x1   :  { %9 = vsyncpa [#allocation6], 0 }
   0x2   :  { %10 = vsyncpa [#allocation3], 0 }
   0x3   :  { %12 = vsyncpa [#allocation3 + $0x1], 0  ;;  %s672_s12 = smov 0   ;;  %s674_s13 = smov 0  }
   0x4   :  { %s676_s14 = smov 0   ;;  %s678_s15 = smov 0  }
   0x5   :  { %s680_s16 = smov 0   ;;  %s682_s17 = smov 0  }
   0x6 LB: > { %s429_s18 = sadd.s32 4294967295, %s645_s17   ;;  %s430_s19 = sadd.s32 4294967294, %s645_s17   ;;  %s645_s17 = sphi %s682_s17, %s18_s17   ;;  %s641_s16 = sphi %s680_s16, %s824_s16   ;;  %s637_s15 = sphi %s678_s15, %s823_s15   ;;  %s633_s14 = sphi %s676_s14, %s822_s14   ;;  %s629_s13 = sphi %s674_s13, %s821_s13   ;;  %s625_s12 = sphi %s672_s12, %s820_s12  }
   0x7   : > { %s33_s20 = sadd.s32 1, %s641_s16  ;;  %s90_s21 = sadd.s32 1, %s633_s14 }
   0x8   : > { %p35_p0 = scmp.ge.s32.totalorder %s33_s20, 3  ;;  %p97_p1 = scmp.ne.s32.totalorder %s633_s14, %s629_s13 }
   0x9   : > { %p98_p2 = scmp.eq.s32.totalorder %s645_s17, 0  ;;  %p131_p3 = scmp.eq.s32.totalorder %s429_s18, 2 }
   0xa   : > { %s826_s20 = smov (%p35_p0, %s33_s20), 0  ;;  %p136_p6 = scmp.ne.s32.totalorder %s629_s13, %s625_s12 }
   0xb   : > { %p711_p4 = por %p98_p2, %p97_p1  ;;  %p715_p5 = por %p131_p3, %p97_p1 }
   0xc   : > { %s84_s24 = ssub.s32 %s641_s16, %s826_s20  ;;  %p137_p8 = scmp.eq.s32.totalorder %s430_s19, 2 }
   0xd   : > { %p88_p7 = scmp.eq.s32.totalorder %s84_s24, 0  ;;  %p431_p9 = scmp.ge.s32.totalorder %s645_s17, 1 }
   0xe   : > { %p144_p10 = scmp.lt.s32.totalorder %s645_s17, 4  ;;  %p728_p11 = por %p137_p8, %p136_p6 }
   0xf   : > { %s726_s25 = scalar_select %p88_p7, %s633_s14, %s90_s21  }
  0x10   : > { %p732_p12 = pnand %p431_p9, %p144_p10  ;;  %p736_p13 = scmp.eq.s32.totalorder %s429_s18, 0 }
  0x11   : > { %s156_s4 = sshll.u32 %s811_s0, 4  ;;  %s166_s7 = sshll.u32 %s812_s1, 4  ;;  %s157_s4 = int_to_ptr.vmem [resolvable:$true] %s156_s4  ;;  %s167_s7 = int_to_ptr.vmem [resolvable:$true] %s166_s7 }
  0x12   : > { %p460_p0 = pneg %p732_p12  ;;  %s647_s8 = smov [#allocation2]  }
  0x13   : > { %s648_s9 = smov [#allocation5]   ;;  %p434_p2 = scmp.ge.s32.totalorder %s645_s17, 3 }
  0x14   : > { %p461_p1 = pnand %p736_p13, %p460_p0 }
  0x15   : > { %173 = sbr.rel (%p434_p2) target bundleno = 32 (0x20), region = 24 }
  0x16   : > { %463 = dma.vmem_to_smem (!%p461_p1), %s157_s4, 16, %s647_s8, [#allocation4]  }
  0x17   : > { %466 = dma.vmem_to_smem (!%p461_p1), %s167_s7, 16, %s648_s9, [#allocation6]  }
  0x1a   : > { %176 = sbr.rel (!%p711_p4) target bundleno = 32 (0x20), region = 28  ;;  %s178_s10 = sand.u32 (%p711_p4), 1, %s633_s14  }
  0x1b   : > { %s436_s11 = sshll.u32 (%p711_p4), %s641_s16, 1  ;;  %s435_s18 = sshll.u32 (%p711_p4), %s178_s10, 2 }
  0x1c   : > { %s187_s24 = scalar_lea.vmem (%p711_p4), %s813_s2, %s436_s11  ;;  %s180_s29 = scalar_lea.vmem (%p711_p4), [#allocation7], %s435_s18 }
  0x1d   : > { %v204_v0 = vld [vmem:[%s187_s24] sm:$0x3] (%p711_p4)  ;;  %v206_v1 = vld [vmem:[%s187_s24 + $0x6] sm:$0x3] (%p711_p4) }
  0x1e   : > { %205 = vst [vmem:[%s180_s29] sm:$0x3] (%p711_p4), %v204_v0 }
  0x1f   : > { %207 = vst [vmem:[%s180_s29 + $0x2] sm:$0x3] %v206_v1 }
  0x20 PF: > { %230 = sbr.rel (%p732_p12) target bundleno = 64 (0x40), region = 62 }
  0x25   : > { %612 = dma.done.wait (%p736_p13), [#allocation4], 16  }
  0x26   : > { %614 = vsyncadd (%p736_p13), [#allocation4], 4294967280 }
  0x27   : > { %616 = dma.done.wait (%p736_p13), [#allocation6], 16  }
  0x28   : > { %618 = vsyncadd (%p736_p13), [#allocation6], 4294967280  ;;  %s243_s22 = sand.u32 1, %s629_s13  }
  0x29   : > { %s440_s30 = sshll.u32 %s243_s22, 2 }
  0x2a   : > { %s245_s4 = scalar_lea.vmem [#allocation7], %s440_s30 }
  0x2b   : > { %249 = sfence }
  0x2c   : > { %v447_v2 = vld [vmem:[%s245_s4] sm:$0xf]   ;;  %s277_s27 = sld [smem:[#allocation2 + %s637_s15]]  ;;  %s443_s6 = sshll.u32 %s637_s15, 1  ;;  %v294_v12 = vlaneseq  ;;  %vm289_vm0 = vcmask 1040384  }
  0x2d   : > { %v448_v3 = vunpack.c.0.s8 %v447_v2  ;;  %s281_s5 = sld [smem:[#allocation5 + %s637_s15]]  ;;  %v449_v4 = vunpack.c.1.s8 %v447_v2  ;;  %s316_s8 = scalar_lea.hbm %s814_s3, %s443_s6 }
  0x2e   : > { %s266_s9 = scalar_lea.vmem [#allocation8], %s440_s30  ;;  %s319_s11 = sshll.u32 %s316_s8, 4  ;;  %vm296_vm1 = vcmp.lt.s32.totalorder %v294_v12, 256  ;;  %s320_s11 = int_to_ptr.hbm [resolvable:$true] %s319_s11 }
  0x2f   : > { %v273_v5 = vand.u32 255, %v448_v3  ;;  %v274_v6 = vand.u32 255, %v449_v4  ;;  %s317_s10 = sshll.u32 %s266_s9, 4  ;;  %s301_s15 = scalar_lea.sflag [#allocation3], %s243_s22  ;;  %s318_s10 = int_to_ptr.vmem [resolvable:$true] %s317_s10 }
  0x30   : > { %s573_s18 = sshra.s32 %s320_s11, 4  ;;  %s579_s29 = scalar_lea.hbm %s814_s3, 12  ;;  %s574_s18 = int_to_ptr.hbm [resolvable:$true] %s573_s18 }
  0x31   : > { %v275_v7 = vcvt.s32.f32 %v273_v5  ;;  %v276_v8 = vcvt.s32.f32 %v274_v6  ;;  %s575_s19 = scalar_lea.hbm %s574_s18, 4  ;;  %p580_p7 = scmp.lt.s32.totalorder %s574_s18, %s814_s3 }
  0x32   : > { %v278_v9 = vstv %s277_s27  ;;  %p576_p3 = scmp.ne.s32.totalorder %s574_s18, %s575_s19  ;;  %p581_p8 = scmp.lt.s32.totalorder %s579_s29, %s575_s19 }
  0x33   : > { %v279_v10 = vmul.f32 %v278_v9, %v275_v7  ;;  %v282_v11 = vstv %s281_s5  ;;  %v280_v13 = vmul.f32 %v278_v9, %v276_v8 }
  0x34   : > { %p577_p4 = pnand %p576_p3, %p715_p5  ;;  %p582_p9 = por %p581_p8, %p580_p7 }
  0x35   : > { %v283_v14 = vadd.f32 %v282_v11, %v279_v10  ;;  %v284_v15 = vadd.f32 %v282_v11, %v280_v13 }
  0x36   : > { %p578_p6 = pneg %p577_p4 }
  0x37   : > { %v287_v16 = vrot.slane %v283_v14, 3  ;;  %v288_v17 = vrot.slane %v284_v15, 3 }
  0x38   : > { %p583_p10 = pnand %p582_p9, %p578_p6 }
  0x39   : > { %v290_v18 = vsel %vm289_vm0, %v283_v14, %v287_v16  ;;  %v291_v19 = vsel %vm289_vm0, %v284_v15, %v288_v17 }
  0x3a   : > { %298 = vst.msk [vmem:[%s266_s9] sm:$0x3] %vm296_vm1, %v290_v18 }
  0x3b   : > { %299 = vst.msk [vmem:[%s266_s9 + $0x2] sm:$0x3] %vm296_vm1, %v291_v19 }
  0x3c   : > { %586 = shalt.err (!%p583_p10)
}
  0x3d   : > { %s649_s22 = smov 32   ;;  %s650_s27 = smov 96  }
  0x3e   : > { %s651_s5 = smov 2  }
  0x3f   : > { %458 = dma.vmem_to_hbm [thread:$0]  (%p715_p5), %s318_s10, 64, %s320_s11, %s301_s15, %s649_s22, %s650_s27, %s651_s5  }
  0x40 PF: > { %p475_p12 = scmp.ge.s32.totalorder %s645_s17, 2  ;;  %s334_s6 = sand.u32 1, %s625_s12  }
  0x41   : > { %s335_s28 = scalar_lea.sflag [#allocation3], %s334_s6 }
  0x42   : > { %p468_p13 = pnand %p475_p12, %p728_p11 }
  0x44   : > { %p469_p0 = pneg %p468_p13 }
  0x46   : > { %620 = dma.done.wait (%p469_p0), %s335_s28, 64  }
  0x47   : > { %622 = vsyncadd (%p469_p0), %s335_s28, 4294967232  ;;  %s18_s17 = sadd.s32 1, %s645_s17   ;;  %s820_s12 = smov %s629_s13 }
  0x48   : > { %p15_p1 = scmp.ge.s32.totalorder %s18_s17, 5   ;;  %s821_s13 = smov %s633_s14 }
  0x49   : > { %s822_s14 = smov %s726_s25  ;;  %s823_s15 = smov %s641_s16 }
  0x4a   : > { %s824_s16 = smov %s826_s20  ;;  %17 = sbr.rel (!%p15_p1) target bundleno = 6 (0x6), region = 115 }
  0x4f   :  { %341 = vsyncpa [#allocation3], 1 }
  0x50   :  { %343 = vsyncpa [#allocation3 + $0x1], 1 }
  0x51   :  { %344 = vsyncpa [#allocation4], 1 }
  0x52   :  { %346 = vsyncpa [#allocation4 + $0x1], 1 }
  0x53   :  { %347 = vsyncpa [#allocation6], 1 }

</bundles_post_ra>
